<compile_context>
chip_gen: v7x
topology: tpu7x:2x2x1
jax: 0.10.0
libtpu: 0.0.40
codegen_flags: <defaults>
</compile_context>

<pallas_src>
import math

import jax
import jax.numpy as jnp
from jax.experimental import pallas as pl
from jax.experimental.pallas import tpu as pltpu

D_MODEL = 64
D_MSA = 21
MAX_LEN = 5000
V_PAD = 32  # vocab padded to 32 for a clean MXU contraction dim


def make_pe_table(max_len=MAX_LEN, d_model=D_MODEL):
    # Matches PositionalEncodeing.__init__ buffer construction.
    position = jnp.arange(max_len, dtype=jnp.float32)[:, None]
    div_term = jnp.exp(jnp.arange(0, d_model, 2, dtype=jnp.float32)
                       * (-(math.log(10000.0) / d_model)))
    ang = position * div_term                              # (max_len, d_model//2)
    pe = jnp.zeros((max_len, d_model), jnp.float32)
    pe = pe.at[:, 0::2].set(jnp.sin(ang))
    pe = pe.at[:, 1::2].set(jnp.cos(ang))
    return pe


def msa_emb_kernel(msa_e_ref, msa_o_ref, pe_ref, tab_ref, out_ref):
    # msa_e_ref / msa_o_ref : (1, nt, Lh) int32   even / odd residue columns
    # pe_ref                : (1, Lh, 2D) f32     [pe[2l] | pe[2l+1]] packed on lanes
    # tab_ref               : (2V, 2D)    f32     block-diagonal embedding table
    # out_ref               : (1, nt, Lh, 2D) f32
    _, nt, lh = msa_e_ref.shape
    two_v, two_d = tab_ref.shape
    v = two_v // 2

    tok_e = msa_e_ref[0]                                   # (nt, Lh) int32
    tok_o = msa_o_ref[0]

    # Combined one-hot over 2V lanes: first V lanes select emb(tok_e), last V
    # lanes select emb(tok_o).  Built with iota + where -> no concat/relayout.
    iota = jax.lax.broadcasted_iota(jnp.int32, (nt, lh, two_v), 2)
    sel = jnp.where(iota < v, tok_e[:, :, None], tok_o[:, :, None] + v)
    one_hot = (sel == iota).astype(jnp.float32)            # (nt, Lh, 2V)

    # Single MXU matmul: (nt*Lh, 2V) @ (2V, 2D) -> lane-dense (nt, Lh, 2D).
    emb = jnp.dot(one_hot.reshape(nt * lh, two_v), tab_ref[...],
                  preferred_element_type=jnp.float32).reshape(nt, lh, two_d)

    # Positional encoding: (1, Lh, 2D) broadcast over the MSA-depth tile.
    # Dropout (p_drop) is identity at inference.
    out_ref[0] = emb + pe_ref[...]


def msa_emb_forward(msa, idx, emb_w, pe_table, n_tile=None):
    B, N, L = msa.shape
    d_msa, D = emb_w.shape

    V = V_PAD
    table = jnp.zeros((V, D), jnp.float32).at[:d_msa].set(emb_w.astype(jnp.float32))
    # Block-diagonal table so one matmul produces [emb(even) | emb(odd)].
    table2 = jnp.zeros((2 * V, 2 * D), jnp.float32)
    table2 = table2.at[:V, :D].set(table).at[V:, D:].set(table)

    # Tiny wrapper-side gathers / slices (B*L rows of PE, B*N*L int32 tokens).
    pe_rows = pe_table[idx].astype(jnp.float32)            # (B, L, D)
    msa_i = msa.astype(jnp.int32)

    # Odd-L inputs: pad one residue column (token 0, zero PE) and slice it off
    # after the call.  Even L stays on the zero-copy fast path.
    L_pad = L + (L % 2)
    if L_pad != L:
        msa_i = jnp.pad(msa_i, ((0, 0), (0, 0), (0, 1)))
        pe_rows = jnp.pad(pe_rows, ((0, 0), (0, 1), (0, 0)))

    Lh = L_pad // 2
    pe_packed = pe_rows.reshape(B, Lh, 2 * D)              # pack even/odd on lanes
    msa_e = msa_i[:, :, 0::2]                              # (B, N, Lh)
    msa_o = msa_i[:, :, 1::2]

    if n_tile is None:
        # Largest MSA-depth tile that (a) divides N, (b) is a multiple of 8
        # (or == N) to satisfy the (8,128) block rule, and (c) keeps the
        # per-step output block under a VMEM budget (Pallas double-buffers it;
        # budget chosen to fit comfortably within v7x's 64 MiB VMEM).
        budget_bytes = 4 << 20
        n_tile = N
        while (n_tile % 2 == 0 and (n_tile // 2) % 8 == 0
               and n_tile * Lh * 2 * D * 4 > budget_bytes):
            n_tile //= 2
    assert N % n_tile == 0

    grid = (B, N // n_tile)

    out = pl.pallas_call(
        msa_emb_kernel,
        out_shape=jax.ShapeDtypeStruct((B, N, Lh, 2 * D), jnp.float32),
        grid_spec=pltpu.PrefetchScalarGridSpec(
            num_scalar_prefetch=0,
            grid=grid,
            in_specs=[
                pl.BlockSpec((1, n_tile, Lh), lambda b, j: (b, j, 0)),
                pl.BlockSpec((1, n_tile, Lh), lambda b, j: (b, j, 0)),
                pl.BlockSpec((1, Lh, 2 * D), lambda b, j: (b, 0, 0)),
                pl.BlockSpec((2 * V, 2 * D), lambda b, j: (0, 0)),
            ],
            out_specs=pl.BlockSpec((1, n_tile, Lh, 2 * D),
                                   lambda b, j: (b, j, 0, 0)),
        ),
        compiler_params=pltpu.CompilerParams(
            dimension_semantics=("parallel", "parallel")),
    )(msa_e, msa_o, pe_packed, table2)

    # Row-major compatible un-packing of the lane-dense output (pure metadata
    # for even L; a trailing slice for the odd-L padded case).
    out = out.reshape(B, N, L_pad, D)
    if L_pad != L:
        out = out[:, :, :L, :]
    return out


def msa_emb_reference(msa, idx, emb_w, pe_table):
    out = emb_w[msa]                                       # (B, N, L, D)
    pe = pe_table[idx]                                     # (B, L, D)
    return out + pe[:, None, :, :]


if __name__ == "__main__":
    key = jax.random.PRNGKey(0)
    k_emb, k_msa, k_msa2 = jax.random.split(key, 3)

    emb_w = jax.random.normal(k_emb, (D_MSA, D_MODEL), jnp.float32)  # nn.Embedding weight ~ N(0,1)
    pe_table = make_pe_table(MAX_LEN, D_MODEL)

    # Even-L fast path.
    B, N, L = 2, 8, 16
    msa = jax.random.randint(k_msa, (B, N, L), 0, D_MSA, dtype=jnp.int32)
    idx = jnp.broadcast_to(jnp.arange(L, dtype=jnp.int32)[None, :], (B, L))
    out = jax.block_until_ready(msa_emb_forward(msa, idx, emb_w, pe_table))
    ref = msa_emb_reference(msa, idx, emb_w, pe_table)
    assert out.shape == (B, N, L, D_MODEL), out.shape
    assert bool(jnp.all(jnp.isfinite(out)))
    max_err = float(jnp.max(jnp.abs(out - ref)))
    assert max_err < 1e-5, f"even-L mismatch vs reference: {max_err}"

    # Odd-L padded path.
    L2 = 15
    msa2 = jax.random.randint(k_msa2, (B, N, L2), 0, D_MSA, dtype=jnp.int32)
    idx2 = jnp.broadcast_to(jnp.arange(L2, dtype=jnp.int32)[None, :], (B, L2))
    out2 = jax.block_until_ready(msa_emb_forward(msa2, idx2, emb_w, pe_table))
    ref2 = msa_emb_reference(msa2, idx2, emb_w, pe_table)
    assert out2.shape == (B, N, L2, D_MODEL), out2.shape
    max_err2 = float(jnp.max(jnp.abs(out2 - ref2)))
    assert max_err2 < 1e-5, f"odd-L mismatch vs reference: {max_err2}"

    print("KERNEL_OK")
</pallas_src>

<mosaic_0001>
module attributes {stable_mosaic.version = 11 : i64} {
  func.func @msa_emb_kernel(%arg0: i32, %arg1: i32, %arg2: memref<1x8x8xi32, #tpu.memory_space<vmem>>, %arg3: memref<1x8x8xi32, #tpu.memory_space<vmem>>, %arg4: memref<1x8x128xf32, #tpu.memory_space<vmem>>, %arg5: memref<64x128xf32, #tpu.memory_space<vmem>>, %arg6: memref<1x8x8x128xf32, #tpu.memory_space<vmem>>) attributes {dimension_semantics = [#tpu.dimension_semantics<parallel>, #tpu.dimension_semantics<parallel>], iteration_bounds = array<i64: 2, 1>, scalar_prefetch = 0 : i64, scratch_operands = 0 : i64, tpu.core_type = #tpu.core_type<tc>, window_params = [{transform_indices = @transform_0, window_bounds = array<i64: 1, 8, 8>}, {transform_indices = @transform_1, window_bounds = array<i64: 1, 8, 8>}, {transform_indices = @transform_2, window_bounds = array<i64: 1, 8, 128>}, {pipeline_mode = #tpu.pipeline_mode<synchronous>, transform_indices = @transform_3, window_bounds = array<i64: 64, 128>}, {transform_indices = @transform_4, window_bounds = array<i64: 1, 8, 8, 128>}]} {
    %c0 = arith.constant 0 : index
    %c0_0 = arith.constant 0 : index
    %c0_1 = arith.constant 0 : index
    %0 = vector.load %arg2[%c0, %c0_0, %c0_1] : memref<1x8x8xi32, #tpu.memory_space<vmem>>, vector<1x8x8xi32>
    %1 = vector.shape_cast %0 : vector<1x8x8xi32> to vector<8x8xi32>
    %c0_2 = arith.constant 0 : index
    %c0_3 = arith.constant 0 : index
    %c0_4 = arith.constant 0 : index
    %2 = vector.load %arg3[%c0_2, %c0_3, %c0_4] : memref<1x8x8xi32, #tpu.memory_space<vmem>>, vector<1x8x8xi32>
    %3 = vector.shape_cast %2 : vector<1x8x8xi32> to vector<8x8xi32>
    %4 = tpu.iota {dimensions = array<i32: 2>} : vector<8x8x64xi32>
    %c32_i32 = arith.constant 32 : i32
    %5 = vector.broadcast %c32_i32 : i32 to vector<8x8x64xi32>
    %6 = arith.cmpi slt, %4, %5 : vector<8x8x64xi32>
    %7 = vector.shape_cast %1 : vector<8x8xi32> to vector<8x8x1xi32>
    %8 = vector.shape_cast %3 : vector<8x8xi32> to vector<8x8x1xi32>
    %c32_i32_5 = arith.constant 32 : i32
    %9 = vector.broadcast %c32_i32_5 : i32 to vector<8x8x1xi32>
    %10 = arith.addi %8, %9 : vector<8x8x1xi32>
    %11 = vector.shape_cast %7 : vector<8x8x1xi32> to vector<8x8x1xi32>
    %12 = vector.broadcast %11 : vector<8x8x1xi32> to vector<8x8x64xi32>
    %13 = vector.shape_cast %10 : vector<8x8x1xi32> to vector<8x8x1xi32>
    %14 = vector.broadcast %13 : vector<8x8x1xi32> to vector<8x8x64xi32>
    %15 = arith.select %6, %12, %14 : vector<8x8x64xi1>, vector<8x8x64xi32>
    %16 = arith.cmpi eq, %15, %4 : vector<8x8x64xi32>
    %17 = arith.extui %16 : vector<8x8x64xi1> to vector<8x8x64xi32>
    %18 = arith.sitofp %17 : vector<8x8x64xi32> to vector<8x8x64xf32>
    %19 = vector.shape_cast %18 : vector<8x8x64xf32> to vector<64x64xf32>
    %c0_6 = arith.constant 0 : index
    %c0_7 = arith.constant 0 : index
    %20 = vector.load %arg5[%c0_6, %c0_7] : memref<64x128xf32, #tpu.memory_space<vmem>>, vector<64x128xf32>
    %cst = arith.constant dense<0.000000e+00> : vector<64x128xf32>
    %21 = tpu.matmul %19, %20, %cst {dimension_numbers = #tpu.dot_dimension_numbers<[1], [0], [0], [1], [0, 0, 1, 1], [], []>} : vector<64x64xf32>, vector<64x128xf32>, vector<64x128xf32> -> vector<64x128xf32>
    %22 = vector.shape_cast %21 : vector<64x128xf32> to vector<8x8x128xf32>
    %c0_8 = arith.constant 0 : index
    %c0_9 = arith.constant 0 : index
    %c0_10 = arith.constant 0 : index
    %23 = vector.load %arg4[%c0_8, %c0_9, %c0_10] : memref<1x8x128xf32, #tpu.memory_space<vmem>>, vector<1x8x128xf32>
    %24 = vector.broadcast %23 : vector<1x8x128xf32> to vector<8x8x128xf32>
    %25 = arith.addf %22, %24 : vector<8x8x128xf32>
    %c0_11 = arith.constant 0 : index
    %c0_12 = arith.constant 0 : index
    %c0_13 = arith.constant 0 : index
    %c0_14 = arith.constant 0 : index
    %26 = vector.load %arg6[%c0_11, %c0_12, %c0_13, %c0_14] : memref<1x8x8x128xf32, #tpu.memory_space<vmem>>, vector<1x8x8x128xf32>
    %27 = vector.shape_cast %26 : vector<1x8x8x128xf32> to vector<8x8x128xf32>
    %28 = vector.shape_cast %25 : vector<8x8x128xf32> to vector<1x8x8x128xf32>
    tpu.vector_store %arg6[%c0_11, %c0_12, %c0_13, %c0_14], %28 {strides = array<i32>} : memref<1x8x8x128xf32, #tpu.memory_space<vmem>>, vector<1x8x8x128xf32>,
    return
  }
  func.func @transform_0(%arg0: i32, %arg1: i32) -> (i32, i32, i32) {
    %c0_i32 = arith.constant 0 : i32
    %c0_i32_0 = arith.constant 0 : i32
    return %arg0, %arg1, %c0_i32 : i32, i32, i32
  }
  func.func @transform_1(%arg0: i32, %arg1: i32) -> (i32, i32, i32) {
    %c0_i32 = arith.constant 0 : i32
    %c0_i32_0 = arith.constant 0 : i32
    return %arg0, %arg1, %c0_i32 : i32, i32, i32
  }
  func.func @transform_2(%arg0: i32, %arg1: i32) -> (i32, i32, i32) {
    %c0_i32 = arith.constant 0 : i32
    %c0_i32_0 = arith.constant 0 : i32
    %c0_i32_1 = arith.constant 0 : i32
    return %arg0, %c0_i32, %c0_i32_0 : i32, i32, i32
  }
  func.func @transform_3(%arg0: i32, %arg1: i32) -> (i32, i32) {
    %c0_i32 = arith.constant 0 : i32
    %c0_i32_0 = arith.constant 0 : i32
    %c0_i32_1 = arith.constant 0 : i32
    return %c0_i32, %c0_i32_0 : i32, i32
  }
  func.func @transform_4(%arg0: i32, %arg1: i32) -> (i32, i32, i32, i32) {
    %c0_i32 = arith.constant 0 : i32
    %c0_i32_0 = arith.constant 0 : i32
    %c0_i32_1 = arith.constant 0 : i32
    return %arg0, %arg1, %c0_i32, %c0_i32_0 : i32, i32, i32, i32
  }
}

</mosaic_0001>

<bundles_post_ra>
// kernel: tpu_custom_call.1
= control target key start
LH: loop header
LB: loop body
LE: loop exit
PB: predicated region body
PF: predicated region fallthrough
CT: control target
= control target key end

     0   :  { %s1556_s0 = inlined_call_operand.hbm [shape: s32[2,8,8], index: 0, kind: input, shape index: {}]   ;;  %s1557_s1 = inlined_call_operand.hbm [shape: s32[2,8,8], index: 1, kind: input, shape index: {}]   ;;  %s1558_s2 = inlined_call_operand.hbm [shape: f32[2,8,128], index: 2, kind: input, shape index: {}]   ;;  %s1559_s3 = inlined_call_operand.hbm [shape: f32[64,128], index: 3, kind: input, shape index: {}]   ;;  %s1560_s4 = inlined_call_operand.hbm [shape: f32[2,8,8,128], index: 4, kind: output, shape index: {}]  }
   0x1   :  { %1578 = sst [smem:[#allocation21_spill]] %s1557_s1 }
   0x2   :  { %1579 = sst [smem:[#allocation22_spill]] %s1560_s4 }
   0x3   :  { %9 = vsyncpa [#allocation3], 0 }
   0x4   :  { %11 = vsyncpa [#allocation3 + $0x1], 0 }
   0x5   :  { %12 = vsyncpa [#allocation6], 0 }
   0x6   :  { %14 = vsyncpa [#allocation6 + $0x1], 0 }
   0x7   :  { %15 = vsyncpa [#allocation9], 0 }
   0x8   :  { %16 = vsyncpa [#allocation4], 0 }
   0x9   :  { %18 = vsyncpa [#allocation4 + $0x1], 0  ;;  %s1227_s15 = smov 0   ;;  %s1229_s16 = smov 0  }
   0xa   :  { %s1231_s17 = smov 0   ;;  %s1233_s18 = smov 0  }
   0xb   :  { %s1235_s19 = smov 0   ;;  %s1237_s20 = smov 0  }
   0xc LB: > { %1580 = sst [smem:[#allocation15_spill]] %s1170_s15  ;;  %s36_s21 = sadd.s32 1, %s1186_s19  ;;  %s1190_s20 = sphi %s1237_s20, %s24_s20   ;;  %s1186_s19 = sphi %s1235_s19, %s1612_s19   ;;  %s1182_s18 = sphi %s1233_s18, %s1611_s18   ;;  %s1178_s17 = sphi %s1231_s17, %s1615_s17   ;;  %s1174_s16 = sphi %s1229_s16, %s1614_s16   ;;  %s1170_s15 = sphi %s1227_s15, %s1613_s15  }
   0xd   : > { %1581 = sst [smem:[#allocation16_spill]] %s1186_s19  ;;  %s45_s22 = sadd.s32 1, %s1178_s17 }
   0xe   : > { %1582 = sst [smem:[#allocation17_spill]] %s1190_s20  ;;  %p38_p0 = scmp.ge.s32.totalorder %s36_s21, 2 }
   0xf   : > { %p1561_p1 = scmp.ne.s32.totalorder %s1178_s17, %s1174_s16  ;;  %p53_p2 = scmp.eq.s32.totalorder %s1190_s20, 0 }
  0x10   : > { %s1617_s21 = smov (%p38_p0, %s36_s21), 0  ;;  %p925_p5 = scmp.lt.s32.totalorder %s1190_s20, 2 }
  0x11   : > { %1583 = sst [smem:[#allocation18_spill]] %s1617_s21  ;;  %p54_p4 = por %p53_p2, %p1561_p1 }
  0x12   : > { %s40_s23 = ssub.s32 %s1186_s19, %s1617_s21  ;;  %s1562_s24 = sand.u32 1, %s1178_s17  }
  0x13   : > { %p43_p6 = scmp.eq.s32.totalorder %s40_s23, 0  ;;  %s1274_s25 = sshll.u32 %s1562_s24, 3 }
  0x14   : > { %s1277_s26 = sshll.u32 %s1186_s19, 7  ;;  %p1279_p7 = pnand %p925_p5, %p54_p4 }
  0x15   : > { %s1284_s28 = scalar_select %p43_p6, %s1178_s17, %s45_s22  }
  0x16   : > { %s1584_s27 = scalar_select %p1279_p7, 1, 0 }
  0x17   : > { %1585 = sst [smem:[#allocation19_spill]] %s1284_s28  ;;  %s217_s29 = sand.u32 1, %s1190_s20  }
  0x18   : > { %s1586_s1 = sld [smem:[#allocation21_spill]]  ;;  %s221_s7 = scalar_lea.vmem [#allocation5], %s1274_s25 }
  0x19   : > { %s229_s8 = sshll.u32 %s221_s7, 4  ;;  %s1296_s9 = scalar_lea.sflag [#allocation6], %s217_s29  ;;  %s1294_s8 = int_to_ptr.vmem [resolvable:$true] %s229_s8 }
  0x1a   : > { %p1302_p9 = pneg %p1279_p7 }
  0x1c   : > { %s1587_s11 = scalar_select %p1302_p9, 1, 0 }
  0x1e   : > { %s1291_s6 = scalar_lea.hbm %s1586_s1, %s1277_s26  ;;  %s987_s14 = scalar_lea.hbm %s1586_s1, 256 }
  0x1f   : > { %s982_s10 = scalar_lea.hbm %s1291_s6, 128  ;;  %p988_p12 = scmp.lt.u32.totalorder %s1291_s6, %s1586_s1 }
  0x20   : > { %p983_p8 = scmp.ne.s32.totalorder %s1291_s6, %s982_s10  ;;  %p989_p13 = scmp.lt.u32.totalorder %s987_s14, %s982_s10 }
  0x21   : > { %p991_p2 = scmp.lt.u32.totalorder %s982_s10, %s1291_s6 }
  0x22   : > { %p985_p10 = pnand %p1302_p9, %p983_p8  ;;  %p990_p0 = por %p989_p13, %p988_p12 }
  0x24   : > { %p986_p11 = pneg %p985_p10  ;;  %p992_p4 = por %p991_p2, %p990_p0 }
  0x26   : > { %p993_p5 = pnand %p992_p4, %p986_p11 }
  0x28   : > { %996 = shalt.err (!%p993_p5)
}
  0x29   : > { %s997_s29 = scalar_lea.vmem %s1294_s8, 128  ;;  %s1192_s30 = smov [#allocation5]  }
  0x2a   : > { %p998_p6 = scmp.ne.s32.totalorder %s1294_s8, %s997_s29  ;;  %s1002_s5 = sshll.u32 %s1192_s30, 4  ;;  %s1003_s5 = int_to_ptr.vmem [resolvable:$false] %s1002_s5 }
  0x2b   : > { %s1004_s7 = scalar_lea.vmem %s1003_s5, 256  ;;  %p1005_p3 = scmp.lt.s32.totalorder %s1294_s8, %s1003_s5 }
  0x2c   : > { %p1000_p8 = pnand %p998_p6, %p1302_p9  ;;  %p1006_p1 = scmp.lt.s32.totalorder %s1004_s7, %s997_s29 }
  0x2e   : > { %p1001_p10 = pneg %p1000_p8  ;;  %p1007_p12 = por %p1006_p1, %p1005_p3 }
  0x30   : > { %p1008_p13 = pnand %p1007_p12, %p1001_p10 }
  0x32   : > { %1011 = shalt.err (!%p1008_p13)
}
  0x33   : > { %916 = dma.hbm_to_vmem [thread:$0]  (!%p1279_p7), %s1291_s6, 128, %s1294_s8, %s1296_s9  }
  0x34   : > { %s1327_s10 = sadd.s32 4294967295, %s1190_s20   ;;  %s788_s12 = sadd.s32 4294967294, %s1190_s20  }
  0x35   : > { %p58_p1 = scmp.ne.s32.totalorder %s1174_s16, %s1170_s15  ;;  %p1565_p3 = scmp.eq.s32.totalorder %s1327_s10, 0 }
  0x36   : > { %p159_p11 = scmp.eq.s32.totalorder %s1327_s10, 1  ;;  %p165_p0 = scmp.eq.s32.totalorder %s788_s12, 1 }
  0x37   : > { %p789_p2 = scmp.ge.s32.totalorder %s1190_s20, 1  ;;  %p1337_p4 = por %p1565_p3, %p58_p1 }
  0x38   : > { %p1589_p5 = scmp.ne.s32.totalorder %s1178_s17, %s1174_s16  ;;  %p1348_p8 = por %p165_p0, %p58_p1 }
  0x39   : > { %s1588_s13 = scalar_select %p1337_p4, 1, 0 }
  0x3a   : > { %p1344_p6 = por %p159_p11, %p1589_p5  ;;  %p172_p10 = scmp.lt.s32.totalorder %s1190_s20, 3 }
  0x3b   : > { %s1591_s8 = scalar_select %p1348_p8, 1, 0 }
  0x3c   : > { %s1590_s6 = scalar_select %p1344_p6, 1, 0 }
  0x3d   : > { %1592 = sst [smem:[#allocation20_spill]] %s1591_s8  ;;  %p1353_p12 = pnand %p789_p2, %p172_p10 }
  0x3e   : > { %s1193_s22 = smov [#allocation8]   ;;  %s1371_s7 = scalar_lea.hbm %s1556_s0, %s1277_s26 }
  0x3f   : > { %s1593_s14 = scalar_select %p1353_p12, 1, 0 }
  0x40   : > { %s184_s23 = sshll.u32 %s1193_s22, 4  ;;  %p906_p13 = pneg %p1353_p12  ;;  %s1357_s23 = int_to_ptr.vmem [resolvable:$true] %s184_s23 }
  0x41   : > { %s202_s12 = scalar_lea.vmem [#allocation2], %s1274_s25  ;;  %s1012_s21 = scalar_lea.hbm %s1559_s3, 1024 }
  0x42   : > { %p1363_p11 = pnand %p906_p13, %p1565_p3  ;;  %s210_s24 = sshll.u32 %s202_s12, 4  ;;  %s1374_s24 = int_to_ptr.vmem [resolvable:$true] %s210_s24 }
  0x43   : > { %p1013_p1 = scmp.ne.s32.totalorder %s1559_s3, %s1012_s21  ;;  %p1019_p10 = scmp.lt.u32.totalorder %s1012_s21, %s1559_s3 }
  0x44   : > { %p1014_p0 = pneg %p1363_p11 }
  0x46   : > { %p1015_p2 = pnand %p1014_p0, %p1013_p1 }
  0x48   : > { %p1016_p5 = pneg %p1015_p2 }
  0x4a   : > { %p1021_p13 = pnand %p1019_p10, %p1016_p5 }
  0x4c   : > { %1024 = shalt.err (!%p1021_p13)
}
  0x4d   : > { %s1025_s12 = scalar_lea.vmem %s1357_s23, 1024  ;;  %p1033_p4 = scmp.lt.s32.totalorder %s1357_s23, %s1357_s23 }
  0x4e   : > { %p1026_p3 = scmp.ne.s32.totalorder %s1357_s23, %s1025_s12  ;;  %p1034_p12 = scmp.lt.s32.totalorder %s1025_s12, %s1025_s12 }
  0x50   : > { %p1028_p8 = pnand %p1026_p3, %p1014_p0  ;;  %p1035_p7 = por %p1034_p12, %p1033_p4 }
  0x52   : > { %p1029_p6 = pneg %p1028_p8 }
  0x54   : > { %p1036_p9 = pnand %p1035_p7, %p1029_p6 }
  0x56   : > { %1039 = shalt.err (!%p1036_p9)
}
  0x57   : > { %s1194_s1 = smov 128   ;;  %s1195_s19 = smov 8  }
  0x58   : > { %909 = dma.hbm_to_vmem [thread:$0]  (!%p1363_p11), %s1559_s3, 1024, %s1357_s23, [#allocation9], %s1194_s1, %s1194_s1, %s1195_s19  }
  0x59   : > { %s1595_s22 = sand.u32 1, %s1178_s17   ;;  %s1040_s5 = scalar_lea.hbm %s1371_s7, 128 }
  0x5a   : > { %s199_s30 = scalar_lea.sflag [#allocation3], %s1595_s22  ;;  %p1041_p7 = scmp.ne.s32.totalorder %s1371_s7, %s1040_s5 }
  0x5b   : > { %p1596_p9 = scmp.ne.s32.totalorder %s1587_s11, 0  ;;  %s1045_s8 = scalar_lea.hbm %s1556_s0, 256 }
  0x5c   : > { %p1046_p6 = scmp.lt.u32.totalorder %s1371_s7, %s1556_s0  ;;  %p1047_p8 = scmp.lt.u32.totalorder %s1045_s8, %s1040_s5 }
  0x5d   : > { %p1043_p3 = pnand %p1041_p7, %p1596_p9  ;;  %p1049_p1 = scmp.lt.u32.totalorder %s1040_s5, %s1371_s7 }
  0x5e   : > { %p1048_p12 = por %p1047_p8, %p1046_p6 }
  0x5f   : > { %p1044_p4 = pneg %p1043_p3 }
  0x60   : > { %p1050_p0 = por %p1049_p1, %p1048_p12 }
  0x62   : > { %p1051_p11 = pnand %p1050_p0, %p1044_p4 }
  0x64   : > { %1054 = shalt.err (!%p1051_p11)
}
  0x65   : > { %s1055_s23 = scalar_lea.vmem %s1374_s24, 128  ;;  %s1196_s20 = smov [#allocation2]  }
  0x66   : > { %p1056_p2 = scmp.ne.s32.totalorder %s1374_s24, %s1055_s23  ;;  %s1060_s29 = sshll.u32 %s1196_s20, 4  ;;  %s1061_s29 = int_to_ptr.vmem [resolvable:$false] %s1060_s29 }
  0x67   : > { %s1062_s4 = scalar_lea.vmem %s1061_s29, 256  ;;  %p1063_p13 = scmp.lt.s32.totalorder %s1374_s24, %s1061_s29 }
  0x68   : > { %p1058_p5 = pnand %p1056_p2, %p1596_p9  ;;  %p1064_p7 = scmp.lt.s32.totalorder %s1062_s4, %s1055_s23 }
  0x6a   : > { %p1059_p10 = pneg %p1058_p5  ;;  %p1065_p3 = por %p1064_p7, %p1063_p13 }
  0x6c   : > { %p1066_p6 = pnand %p1065_p3, %p1059_p10 }
  0x6e   : > { %1069 = shalt.err (!%p1066_p6)
}
  0x6f   : > { %p1597_p4 = scmp.ne.s32.totalorder %s1584_s27, 0  ;;  %s1424_s1 = scalar_lea.hbm %s1558_s2, %s1277_s26 }
  0x70   : > { %s240_s19 = scalar_lea.vmem [#allocation7], %s1274_s25  ;;  %s1070_s28 = scalar_lea.hbm %s1424_s1, 128 }
  0x71   : > { %913 = dma.hbm_to_vmem [thread:$0]  (!%p1597_p4), %s1371_s7, 128, %s1374_s24, %s199_s30  }
  0x72   : > { %s247_s21 = sshll.u32 %s240_s19, 4  ;;  %p1071_p8 = scmp.ne.s32.totalorder %s1424_s1, %s1070_s28  ;;  %s248_s21 = int_to_ptr.vmem [resolvable:$true] %s247_s21 }
  0x73   : > { %s1075_s24 = scalar_lea.hbm %s1558_s2, 256  ;;  %p1076_p0 = scmp.lt.u32.totalorder %s1424_s1, %s1558_s2 }
  0x74   : > { %p1073_p12 = pnand %p1071_p8, %p1596_p9  ;;  %p1077_p11 = scmp.lt.u32.totalorder %s1075_s24, %s1070_s28 }
  0x75   : > { %p1079_p5 = scmp.lt.u32.totalorder %s1070_s28, %s1424_s1 }
  0x76   : > { %p1074_p1 = pneg %p1073_p12  ;;  %p1078_p2 = por %p1077_p11, %p1076_p0 }
  0x78   : > { %p1080_p10 = por %p1079_p5, %p1078_p2 }
  0x7a   : > { %p1081_p13 = pnand %p1080_p10, %p1074_p1 }
  0x7c   : > { %1084 = shalt.err (!%p1081_p13)
}
  0x7d   : > { %s1085_s25 = scalar_lea.vmem %s248_s21, 128  ;;  %s1197_s26 = smov [#allocation7]  }
  0x7e   : > { %p1086_p7 = scmp.ne.s32.totalorder %s248_s21, %s1085_s25  ;;  %s1090_s12 = sshll.u32 %s1197_s26, 4  ;;  %s1091_s12 = int_to_ptr.vmem [resolvable:$false] %s1090_s12 }
  0x7f   : > { %s1092_s23 = scalar_lea.vmem %s1091_s12, 256  ;;  %p1093_p8 = scmp.lt.s32.totalorder %s248_s21, %s1091_s12 }
  0x80   : > { %p1088_p3 = pnand %p1086_p7, %p1596_p9  ;;  %p1094_p12 = scmp.lt.s32.totalorder %s1092_s23, %s1085_s25 }
  0x82   : > { %p1089_p6 = pneg %p1088_p3  ;;  %p1095_p4 = por %p1094_p12, %p1093_p8 }
  0x84   : > { %p1096_p0 = pnand %p1095_p4, %p1089_p6 }
  0x86   : > { %1099 = shalt.err (!%p1096_p0)
}
  0x87   : > { %p1598_p11 = scmp.ne.s32.totalorder %s1584_s27, 0  ;;  %p1599_p1 = scmp.ne.s32.totalorder %s1593_s14, 0 }
  0x88   : > { %s1448_s11 = sand.u32 (!%p1599_p1), 1, %s1174_s16   ;;  %p1600_p9 = scmp.ne.s32.totalorder (!%p1599_p1), %s1588_s13, 0 }
  0x89   : > { %919 = dma.hbm_to_vmem [thread:$0]  (!%p1598_p11), %s1424_s1, 128, %s248_s21, %s1296_s9  }
  0x8a   : > { %256 = sbr.rel (%p1599_p1) target bundleno = 536 (0x218), region = 36  ;;  %s1451_s20 = sshll.u32 (!%p1599_p1), %s1448_s11, 3 }
  0x8b   : > { %s259_s29 = scalar_lea.sflag (!%p1599_p1), [#allocation3], %s1448_s11  ;;  %s262_s4 = scalar_lea.vmem (!%p1599_p1), [#allocation2], %s1451_s20 }
  0x91   : > { %1153 = dma.done.wait (%p1600_p9), %s259_s29, 128  }
  0x92   : > { %1155 = vsyncadd (%p1600_p9), %s259_s29, 4294967168  ;;  %s267_s27 = sand.u32 1, %s1327_s10   ;;  %s271_s14 = scalar_lea.vmem [#allocation5], %s1451_s20 }
  0x93   : > { %s268_s9 = scalar_lea.sflag [#allocation6], %s267_s27 }
  0x94   : > { %1157 = dma.done.wait (%p1600_p9), %s268_s9, 256  }
  0x95   : > { %1159 = vsyncadd (%p1600_p9), %s268_s9, 4294967040  ;;  %s280_s15 = scalar_lea.vmem [#allocation7], %s1451_s20  ;;  %p1601_p4 = scmp.eq.s32.totalorder %s1327_s10, 0 }
  0x97   : > { %1161 = dma.done.wait (%p1601_p4), [#allocation9], 1024   ;;  %p1602_p2 = pmov %p1601_p4 }
  0x98   : > { %v322_v0 = vlaneseq  ;;  %v321_v6 = vld [vmem:[%s271_s14] sm:$0xff]  ;;  %v479_v13 = vld [vmem:[#allocation8 + $0x10] sm:$0xff]  ;;  %v480_v14 = vld [vmem:[#allocation8 + $0x18] sm:$0xff]  ;;  %vm485_vm1 = vcmask 523264   ;;  %v1198_v53 = vmov 0.0   ;;  %s803_s10 = sshll.u32 %s1448_s11, 6 }
  0x99   : > { %1163 = vsyncadd (%p1602_p2), [#allocation9], 4294966272  ;;  %v477_v9 = vld [vmem:[#allocation8] sm:$0xff]  ;;  %v478_v10 = vld [vmem:[#allocation8 + $0x8] sm:$0xff]  ;;  %v874_v17 = vpack.c.bf16 %v480_v14, %v479_v13  ;;  %s318_s13 = scalar_lea.vmem [#allocation10], %s803_s10  ;;  %s825_s1 = sshll.u32 %s1182_s18, 10 }
  0x9a   : > { %v1471_v1 = vshrl.u32 %v322_v0, 7  ;;  %v320_v15 = vld [vmem:[%s262_s4] sm:$0xff]  ;;  %v870_v16 = vpack.c.bf16 %v478_v10, %v477_v9  ;;  %v481_v20 = vld [vmem:[#allocation8 + $0x20] sm:$0xff]  ;;  %v482_v21 = vld [vmem:[#allocation8 + $0x28] sm:$0xff]  ;;  %v323_v42 = vand.u32 127, %v322_v0  ;;  %s648_s8 = sshll.u32 %s318_s13, 4  ;;  %s1502_s8 = int_to_ptr.vmem [resolvable:$true] %s648_s8 }
  0x9b   : > { %v878_v22 = vpack.c.bf16 %v482_v21, %v481_v20  ;;  %v483_v27 = vld [vmem:[#allocation8 + $0x30] sm:$0xff]  ;;  %v484_v28 = vld [vmem:[#allocation8 + $0x38] sm:$0xff]  ;;  %s1603_s28 = sld [smem:[#allocation22_spill]]  ;;  %s633_s18 = scalar_lea.sflag [#allocation4], %s1448_s11 }
  0x9c   : > { %v334_v2 = vsub.s32 1, %v1471_v1  ;;  %v327_v3 = vsub.s32 0, %v1471_v1  ;;  %v362_v4 = vsub.s32 5, %v1471_v1  ;;  %v355_v5 = vsub.s32 4, %v1471_v1  ;;  %871 = vmatprep.subr.bf16.mxu0 %v870_v16  ;;  %886 = vmatprep.subr.bf16.mxu1 %v870_v16  ;;  %s1100_s5 = scalar_lea.vmem %s1502_s8, 1024  ;;  %p1604_p10 = scmp.ne.s32.totalorder %s1590_s6, 0 }
  0x9d   : > { %873 = vmatpush3.bf16.msra.mxu0 %v870_v16  ;;  %890 = vmatpush3.bf16.msra.mxu1 %v870_v16  ;;  %v369_v25 = vsub.s32 6, %v1471_v1  ;;  %v341_v26 = vsub.s32 2, %v1471_v1  ;;  %v882_v29 = vpack.c.bf16 %v484_v28, %v483_v27  ;;  %v376_v32 = vsub.s32 7, %v1471_v1  ;;  %p1101_p5 = scmp.ne.s32.totalorder %s1502_s8, %s1100_s5  ;;  %s1199_s24 = smov [#allocation10]  }
  0x9e   : > { %v391_v7 = vrot.slane %v321_v6, %v334_v2  ;;  %v384_v8 = vrot.slane %v321_v6, %v327_v3  ;;  %v419_v11 = vrot.slane %v321_v6, %v362_v4  ;;  %v412_v12 = vrot.slane %v321_v6, %v355_v5  ;;  %875 = vmatprep.subr.bf16.mxu0 %v874_v17  ;;  %s1104_s7 = sshll.u32 %s1199_s24, 4  ;;  %s1105_s7 = int_to_ptr.vmem [resolvable:$false] %s1104_s7 }
  0x9f   : > { %v356_v18 = vrot.slane %v320_v15, %v355_v5  ;;  %v328_v19 = vrot.slane %v320_v15, %v327_v3  ;;  %887 = vmatprep.subr.bf16.mxu1 %v874_v17  ;;  %v363_v23 = vrot.slane %v320_v15, %v362_v4  ;;  %v335_v24 = vrot.slane %v320_v15, %v334_v2  ;;  %p1102_p13 = pnand %p1101_p5, %p1604_p10  ;;  %s1106_s30 = scalar_lea.vmem %s1105_s7, 2048 }
  0xa0   : > { %393 = vbcast.lane.b32.xlu1 %v391_v7, 256  ;;  %386 = vbcast.lane.b32.xlu0 %v384_v8, 256  ;;  %v426_v30 = vrot.slane %v321_v6, %v369_v25  ;;  %v398_v31 = vrot.slane %v321_v6, %v341_v26  ;;  %v348_v33 = vsub.s32 3, %v1471_v1  ;;  %v433_v34 = vrot.slane %v321_v6, %v376_v32  ;;  %p1107_p3 = scmp.lt.s32.totalorder %s1502_s8, %s1105_s7  ;;  %p1108_p6 = scmp.lt.s32.totalorder %s1106_s30, %s1100_s5 }
  0xa1   : > { %877 = vmatpush3.bf16.msra.mxu0 %v874_v17  ;;  %891 = vmatpush3.bf16.msra.mxu1 %v874_v17  ;;  %v370_v36 = vrot.slane %v320_v15, %v369_v25  ;;  %v342_v37 = vrot.slane %v320_v15, %v341_v26  ;;  %v377_v38 = vrot.slane %v320_v15, %v376_v32  ;;  %vm324_vm0 = vcmp.lt.s32.totalorder %v323_v42, 32  ;;  %s1507_s22 = scalar_lea.hbm %s1603_s28, %s825_s1  ;;  %p1103_p7 = pneg %p1102_p13 }
  0xa2   : > { %879 = vmatprep.subr.bf16.mxu0 %v878_v22  ;;  %888 = vmatprep.subr.bf16.mxu1 %v878_v22  ;;  %v405_v35 = vrot.slane %v321_v6, %v348_v33  ;;  %v349_v39 = vrot.slane %v320_v15, %v348_v33  ;;  %p1109_p8 = por %p1108_p6, %p1107_p3 }
  0xa4   : > { %421 = vbcast.lane.b32.xlu1 %v419_v11, 256  ;;  %414 = vbcast.lane.b32.xlu0 %v412_v12, 256  ;;  %p1110_p12 = pnand %p1109_p8, %p1103_p7 }
  0xa5   : > { %881 = vmatpush3.bf16.msra.mxu0 %v878_v22  ;;  %892 = vmatpush3.bf16.msra.mxu1 %v878_v22 }
  0xa6   : > { %883 = vmatprep.subr.bf16.mxu0 %v882_v29  ;;  %889 = vmatprep.subr.bf16.mxu1 %v882_v29 }
  0xa8   : > { %358 = vbcast.lane.b32.xlu1 %v356_v18, 256  ;;  %330 = vbcast.lane.b32.xlu0 %v328_v19, 256  ;;  %v615_v18 = vld [vmem:[%s280_s15] sm:$0xff] }
  0xa9   : > { %885 = vmatpush3.bf16.msra.mxu0 %v882_v29  ;;  %893 = vmatpush3.bf16.msra.mxu1 %v882_v29 }
  0xac   : > { %365 = vbcast.lane.b32.xlu1 %v363_v23, 256  ;;  %337 = vbcast.lane.b32.xlu0 %v335_v24, 256 }
  0xb0   : > { %428 = vbcast.lane.b32.xlu1 %v426_v30, 256  ;;  %400 = vbcast.lane.b32.xlu0 %v398_v31, 256 }
  0xb4   : > { %435 = vbcast.lane.b32.xlu1 %v433_v34, 256  ;;  %407 = vbcast.lane.b32.xlu0 %v405_v35, 256 }
  0xb8   : > { %372 = vbcast.lane.b32.xlu1 %v370_v36, 256  ;;  %344 = vbcast.lane.b32.xlu0 %v342_v37, 256 }
  0xbc   : > { %379 = vbcast.lane.b32.xlu1 %v377_v38, 256  ;;  %351 = vbcast.lane.b32.xlu0 %v349_v39, 256 }
 0x112   : > { %v394_v40 = vpop.permute.xlu1 %393  ;;  %v387_v41 = vpop.permute.xlu0 %386 }
 0x113   : > { %v437_v45 = vadd.s32 32, %v387_v41  ;;  %v438_v51 = vadd.s32 32, %v394_v40 }
 0x116   : > { %v422_v43 = vpop.permute.xlu1 %421  ;;  %v415_v44 = vpop.permute.xlu0 %414 }
 0x117   : > { %v441_v46 = vadd.s32 32, %v415_v44  ;;  %v442_v52 = vadd.s32 32, %v422_v43 }
 0x11a   : > { %v359_v47 = vpop.permute.xlu1 %358  ;;  %v331_v48 = vpop.permute.xlu0 %330 }
 0x11b   : > { %v449_v49 = vsel %vm324_vm0, %v359_v47, %v441_v46  ;;  %v445_v50 = vsel %vm324_vm0, %v331_v48, %v437_v45 }
 0x11c   : > { %vm457_vm2 = vcmp.eq.s32.totalorder %v449_v49, %v323_v42  ;;  %vm453_vm3 = vcmp.eq.s32.totalorder %v445_v50, %v323_v42 }
 0x11d   : > { %v808_v54 = vsel %vm457_vm2, 1.0, %v1198_v53  ;;  %v804_v55 = vsel %vm453_vm3, 1.0, %v1198_v53 }
 0x11e   : > { %864 = vmatprep.mubr.msk.f32.mxu1 %vm485_vm1, %v808_v54  ;;  %v366_v56 = vpop.permute.xlu1 %365  ;;  %858 = vmatprep.mubr.msk.f32.mxu0 %vm485_vm1, %v804_v55  ;;  %v338_v57 = vpop.permute.xlu0 %337 }
 0x11f   : > { %v450_v58 = vsel %vm324_vm0, %v366_v56, %v442_v52  ;;  %v446_v59 = vsel %vm324_vm0, %v338_v57, %v438_v51 }
 0x120   : > { %vm458_vm4 = vcmp.eq.s32.totalorder %v450_v58, %v323_v42  ;;  %vm454_vm5 = vcmp.eq.s32.totalorder %v446_v59, %v323_v42 }
 0x121   : > { %v809_v60 = vsel %vm458_vm4, 1.0, %v1198_v53  ;;  %v805_v61 = vsel %vm454_vm5, 1.0, %v1198_v53 }
 0x122   : > { %865 = vmatmul.mubr.msk.f32.vlgmr.msra.gmra.mrb[0].mxu1 %vm485_vm1, %v809_v60  ;;  %v429_v62 = vpop.permute.xlu1 %428  ;;  %859 = vmatmul.mubr.msk.f32.vlgmr.msra.gmra.mrb[0].mxu0 %vm485_vm1, %v805_v61  ;;  %v401_v63 = vpop.permute.xlu0 %400 }
 0x123   : > { %v443_v2 = vadd.s32 32, %v429_v62  ;;  %v439_v3 = vadd.s32 32, %v401_v63 }
 0x126   : > { %v436_v0 = vpop.permute.xlu1 %435  ;;  %v408_v1 = vpop.permute.xlu0 %407 }
 0x127   : > { %v444_v8 = vadd.s32 32, %v436_v0  ;;  %v440_v9 = vadd.s32 32, %v408_v1 }
 0x12a   : > { %v373_v4 = vpop.permute.xlu1 %372  ;;  %v345_v5 = vpop.permute.xlu0 %344 }
 0x12b   : > { %v451_v6 = vsel %vm324_vm0, %v373_v4, %v443_v2  ;;  %v447_v7 = vsel %vm324_vm0, %v345_v5, %v439_v3 }
 0x12c   : > { %vm459_vm6 = vcmp.eq.s32.totalorder %v451_v6, %v323_v42  ;;  %vm455_vm7 = vcmp.eq.s32.totalorder %v447_v7, %v323_v42 }
 0x12d   : > { %v810_v10 = vsel %vm459_vm6, 1.0, %v1198_v53  ;;  %v806_v11 = vsel %vm455_vm7, 1.0, %v1198_v53 }
 0x12e   : > { %867 = vmatprep.mubr.msk.f32.mxu1 %vm485_vm1, %v810_v10  ;;  %v380_v12 = vpop.permute.xlu1 %379  ;;  %861 = vmatprep.mubr.msk.f32.mxu0 %vm485_vm1, %v806_v11  ;;  %v352_v13 = vpop.permute.xlu0 %351 }
 0x12f   : > { %v452_v14 = vsel %vm324_vm0, %v380_v12, %v444_v8  ;;  %v448_v15 = vsel %vm324_vm0, %v352_v13, %v440_v9 }
 0x130   : > { %vm460_vm8 = vcmp.eq.s32.totalorder %v452_v14, %v323_v42  ;;  %vm456_vm9 = vcmp.eq.s32.totalorder %v448_v15, %v323_v42 }
 0x131   : > { %v807_v16 = vsel %vm456_vm9, 1.0, %v1198_v53  ;;  %v811_v17 = vsel %vm460_vm8, 1.0, %v1198_v53 }
 0x132   : > { %862 = vmatmul.mubr.msk.f32.gmra.mrb[2].mxu0 %vm485_vm1, %v807_v16  ;;  %868 = vmatmul.mubr.msk.f32.gmra.mrb[2].mxu1 %vm485_vm1, %v811_v17 }
 0x1f5   : > { %v860_v19 = vpop.f32.mrb[0].mxu0  ;;  %v866_v20 = vpop.f32.mrb[0].mxu1 }
 0x1f6   : > { %v617_v21 = vadd.f32 %v860_v19, %v615_v18  ;;  %v621_v22 = vadd.f32 %v866_v20, %v615_v18  ;;  %v576_v23 = vpop.f32.mrb[1].mxu0  ;;  %v596_v24 = vpop.f32.mrb[1].mxu1 }
 0x1f7   : > { %v616_v25 = vadd.f32 %v615_v18, %v576_v23  ;;  %v620_v26 = vadd.f32 %v615_v18, %v596_v24 }
 0x1f8   : > { %625 = vst [vmem:[%s318_s13 + $0x8] sm:$0xff] %v617_v21  ;;  %629 = vst [vmem:[%s318_s13 + $0x28] sm:$0xff] %v621_v22 }
 0x1f9   : > { %624 = vst [vmem:[%s318_s13] sm:$0xff] %v616_v25  ;;  %628 = vst [vmem:[%s318_s13 + $0x20] sm:$0xff] %v620_v26 }
 0x205   : > { %v863_v27 = vpop.f32.mrb[2].mxu0  ;;  %v869_v28 = vpop.f32.mrb[2].mxu1 }
 0x206   : > { %v619_v29 = vadd.f32 %v863_v27, %v615_v18  ;;  %v623_v30 = vadd.f32 %v869_v28, %v615_v18  ;;  %v586_v31 = vpop.f32.mrb[3].mxu0  ;;  %v606_v32 = vpop.f32.mrb[3].mxu1 }
 0x207   : > { %v618_v33 = vadd.f32 %v615_v18, %v586_v31  ;;  %v622_v34 = vadd.f32 %v615_v18, %v606_v32 }
 0x208   : > { %627 = vst [vmem:[%s318_s13 + $0x18] sm:$0xff] %v619_v29  ;;  %631 = vst [vmem:[%s318_s13 + $0x38] sm:$0xff] %v623_v30 }
 0x209   : > { %626 = vst [vmem:[%s318_s13 + $0x10] sm:$0xff] %v618_v33  ;;  %630 = vst [vmem:[%s318_s13 + $0x30] sm:$0xff] %v622_v34 }
 0x20a   : > { %1113 = shalt.err (!%p1110_p12)
}
 0x20b   : > { %s1114_s25 = scalar_lea.hbm %s1507_s22, 1024  ;;  %s1118_s23 = scalar_lea.hbm %s1603_s28, 2048 }
 0x20c   : > { %p1115_p0 = scmp.ne.s32.totalorder %s1507_s22, %s1114_s25  ;;  %p1119_p9 = scmp.lt.u32.totalorder %s1507_s22, %s1603_s28 }
 0x20d   : > { %p1120_p4 = scmp.lt.u32.totalorder %s1118_s23, %s1114_s25  ;;  %p1122_p5 = scmp.lt.u32.totalorder %s1114_s25, %s1507_s22 }
 0x20e   : > { %p1116_p11 = pnand %p1115_p0, %p1604_p10 }
 0x20f   : > { %p1121_p2 = por %p1120_p4, %p1119_p9 }
 0x210   : > { %p1117_p1 = pneg %p1116_p11 }
 0x211   : > { %p1123_p13 = por %p1122_p5, %p1121_p2 }
 0x213   : > { %p1124_p7 = pnand %p1123_p13, %p1117_p1 }
 0x215   : > { %1127 = shalt.err (!%p1124_p7)
}
 0x216   : > { %s1200_s4 = smov 128   ;;  %s1201_s27 = smov 8  }
 0x217   : > { %904 = dma.vmem_to_hbm [thread:$0]  (%p1604_p10), %s1502_s8, 1024, %s1507_s22, %s633_s18, %s1200_s4, %s1200_s4, %s1201_s27  }
 0x218 PF: > { %s1605_s9 = sld [smem:[#allocation15_spill]]  ;;  %s1606_s14 = sld [smem:[#allocation20_spill]] }
 0x219   : > { %s1607_s15 = sld [smem:[#allocation17_spill]] }
 0x21e   : > { %s663_s10 = sand.u32 1, %s1605_s9   ;;  %p1608_p3 = scmp.ne.s32.totalorder %s1606_s14, 0 }
 0x21f   : > { %p1609_p6 = scmp.ge.s32.totalorder %s1607_s15, 2  ;;  %s664_s13 = scalar_lea.sflag [#allocation4], %s663_s10 }
 0x221   : > { %p921_p8 = pnand %p1609_p6, %p1608_p3 }
 0x223   : > { %1165 = dma.done.wait (!%p921_p8), %s664_s13, 1024  }
 0x224   : > { %1167 = vsyncadd (!%p921_p8), %s664_s13, 4294966272  ;;  %s24_s20 = sadd.s32 1, %s1607_s15   ;;  %s1610_s1 = sld [smem:[#allocation19_spill]] }
 0x225   : > { %p21_p12 = scmp.ge.s32.totalorder %s24_s20, 4   ;;  %s1611_s18 = sld [smem:[#allocation16_spill]] }
 0x226   : > { %s1612_s19 = sld [smem:[#allocation18_spill]]  ;;  %s1613_s15 = smov %s1174_s16 }
 0x227   : > { %s1614_s16 = smov %s1178_s17  ;;  %23 = sbr.rel (!%p21_p12) target bundleno = 12 (0xc), region = 109 }
 0x22a   : > { %s1615_s17 = smov %s1610_s1 }
 0x22e   :  { %669 = vsyncpa [#allocation3], 1 }
 0x22f   :  { %671 = vsyncpa [#allocation3 + $0x1], 1 }
 0x230   :  { %672 = vsyncpa [#allocation6], 1 }
 0x231   :  { %674 = vsyncpa [#allocation6 + $0x1], 1 }
 0x232   :  { %675 = vsyncpa [#allocation9], 1 }
 0x233   :  { %676 = vsyncpa [#allocation4], 1 }
 0x234   :  { %678 = vsyncpa [#allocation4 + $0x1], 1 }

</bundles_post_ra>
